<compile_context>
chip_gen: v7x
topology: tpu7x:2x2x1
jax: 0.10.0
libtpu: 0.0.40
codegen_flags: <defaults>
</compile_context>

<pallas_src>
import math
from functools import partial

import jax
import jax.numpy as jnp
from jax.experimental import pallas as pl
from jax.experimental.pallas import tpu as pltpu


def _round_up(a, b):
    return (a + b - 1) // b * b


def _choose_tile(P, N, tp_max=512):
    """Pp = round_up(P, 128); TP = 128 * (largest divisor of Pp/128 with
    TP <= tp_max) so no grid step is mostly padding.  If the whole grid would
    have < 2 parallel steps, shrink TP so the v7x megacore gets a split."""
    Pp = _round_up(P, 128)
    nb = Pp // 128
    divs = [d for d in range(1, nb + 1) if nb % d == 0]
    d = max(e for e in divs if e * 128 <= tp_max)
    if N * (nb // d) < 2:
        smaller = [e for e in divs if nb // e >= 2]
        if smaller:
            d = max(smaller)
    return d * 128, Pp


# ---------------------------------------------------------------------------
# Pallas kernel: conv-as-matmul on the pre-combined deformable im2col slab.
#   col_ref : (1, CKp, TP)   bf16  im2col columns (cin-major, tap-minor)
#   wt_ref  : (Coutp, CKp)   bf16  conv weight, resident across the grid
#   b_ref   : (Coutp, 1)     f32   bias
#   o_ref   : (1, Coutp, TP) f32   lane-dense output tile
# ---------------------------------------------------------------------------
def _mdc_kernel(col_ref, wt_ref, b_ref, o_ref):
    out = jnp.dot(wt_ref[...], col_ref[0],
                  preferred_element_type=jnp.float32)        # MXU, f32 acc
    o_ref[0] = (out + b_ref[...]).astype(o_ref.dtype)


# ---------------------------------------------------------------------------
# JAX-side prep: sampling positions, mask-folded bilinear weights, gathers,
# and the folded 4-corner combine -> one bf16 im2col slab.
# ---------------------------------------------------------------------------
def _prepare_im2col(x, offset, mask, kH, kW, stride, padding, dilation):
    """Returns col: (N, CKp, Pp) bf16 with CKp = round_up(Cin*K, 16)."""
    N, Cin, H, W = x.shape
    assert H >= 1 and W >= 2
    K = kH * kW
    Ho = (H + 2 * padding - dilation * (kH - 1) - 1) // stride + 1
    Wo = (W + 2 * padding - dilation * (kW - 1) - 1) // stride + 1
    P = Ho * Wo
    f32 = jnp.float32

    TP, Pp = _choose_tile(P, N)
    CKp = _round_up(Cin * K, 16)          # bf16 sublane-pack aligned contraction

    # --- sampling positions -------------------------------------------------
    ki = jnp.arange(kH)
    kj = jnp.arange(kW)
    ho = jnp.arange(Ho)
    wo = jnp.arange(Wo)
    base_y = (ho * stride - padding)[None, :, None] + (ki * dilation)[:, None, None]
    base_x = (wo * stride - padding)[None, None, :] + (kj * dilation)[:, None, None]
    base_y = jnp.broadcast_to(base_y[:, None], (kH, kW, Ho, 1)).reshape(K, Ho, 1)
    base_x = jnp.broadcast_to(base_x[None], (kH, kW, 1, Wo)).reshape(K, 1, Wo)

    off = offset.reshape(N, K, 2, Ho, Wo).astype(f32)          # per-tap [dy, dx]
    py = base_y[None].astype(f32) + off[:, :, 0]               # (N, K, Ho, Wo)
    px = base_x[None].astype(f32) + off[:, :, 1]

    y0 = jnp.floor(py).astype(jnp.int32)
    x0 = jnp.floor(px).astype(jnp.int32)
    ly = py - y0.astype(f32)
    lx = px - x0.astype(f32)

    # whole-sample gate + per-corner validity (mmcv DCNv2 border semantics)
    inb = ((py > -1.0) & (px > -1.0) & (py < H) & (px < W)).astype(f32)
    c00 = ((y0 >= 0) & (x0 >= 0)).astype(f32)
    c01 = ((y0 >= 0) & (x0 + 1 <= W - 1)).astype(f32)
    c10 = ((y0 + 1 <= H - 1) & (x0 >= 0)).astype(f32)
    c11 = ((y0 + 1 <= H - 1) & (x0 + 1 <= W - 1)).astype(f32)

    m = mask.reshape(N, K, Ho, Wo).astype(f32)                 # fold modulation here
    w00 = ((1.0 - ly) * (1.0 - lx) * c00 * inb * m).reshape(N, 1, K * P)
    w01 = ((1.0 - ly) * lx * c01 * inb * m).reshape(N, 1, K * P)
    w10 = (ly * (1.0 - lx) * c10 * inb * m).reshape(N, 1, K * P)
    w11 = (ly * lx * c11 * inb * m).reshape(N, 1, K * P)

    # --- corner value gather: 2 gathers instead of 4 (x0 / x0+1 adjacency) --
    # TODO(synk): profile end-to-end; if these XLA gathers dominate, move the
    # gather into the kernel (x via memory_space=pl.ANY + PrefetchScalarGridSpec
    # row tables + manual pltpu.make_async_copy) to avoid im2col in HBM.
    HW = H * W
    xf = x.reshape(N, Cin, HW).astype(f32)
    x_shift = jnp.concatenate([xf[:, :, 1:], jnp.zeros((N, Cin, 1), f32)], axis=-1)
    x_pair = jnp.stack([xf, x_shift], axis=-1)                 # (N, Cin, HW, 2)

    x0c = jnp.clip(x0, 0, W - 2)                               # pair (x0c, x0c+1) stays in-row
    y0c = jnp.clip(y0, 0, H - 1)
    y1c = jnp.clip(y0 + 1, 0, H - 1)
    idx0 = (y0c * W + x0c).reshape(N, K * P)
    idx1 = (y1c * W + x0c).reshape(N, K * P)

    gather = jax.vmap(lambda xp, ind: xp[:, ind, :])           # -> (Cin, K*P, 2)
    g0 = gather(x_pair, idx0)                                  # (N, Cin, K*P, 2)
    g1 = gather(x_pair, idx1)

    # select which element of the pair is the wanted column (weights gate the
    # out-of-range cases, so the "don't care" branches are harmless)
    sel_hi = (x0 >= W - 1).reshape(N, 1, K * P)
    sel_lo = (x0 < 0).reshape(N, 1, K * P)
    v00 = jnp.where(sel_hi, g0[..., 1], g0[..., 0])
    v01 = jnp.where(sel_lo, g0[..., 0], g0[..., 1])
    v10 = jnp.where(sel_hi, g1[..., 1], g1[..., 0])
    v11 = jnp.where(sel_lo, g1[..., 0], g1[..., 1])            # (N, Cin, K*P)

    # --- fold bilinear combine + modulation (f32) -> single im2col slab -----
    col = v00 * w00 + v01 * w01 + v10 * w10 + v11 * w11        # (N, Cin, K*P)
    col = col.reshape(N, Cin * K, P)                           # cin-major, tap-minor
    col = jnp.pad(col, ((0, 0), (0, CKp - Cin * K), (0, Pp - P)))
    col = col.astype(jnp.bfloat16)
    return col, (Ho, Wo, P, Pp, TP, CKp)


@partial(jax.jit, static_argnames=("stride", "padding", "dilation",
                                   "groups", "deformable_groups"))
def modulated_deform_conv(x, offset, mask, weight, bias=None, stride=1, padding=0,
                          dilation=1, groups=1, deformable_groups=1):
    # TODO(synk): groups > 1 / deformable_groups > 1 channel grouping not implemented.
    assert groups == 1 and deformable_groups == 1
    N, Cin, H, W = x.shape
    Cout, _, kH, kW = weight.shape
    K = kH * kW
    if bias is None:
        bias = jnp.zeros((Cout,), jnp.float32)

    col, (Ho, Wo, P, Pp, TP, CKp) = _prepare_im2col(
        x, offset, mask, kH, kW, stride, padding, dilation)

    # conv weight: row-major flatten of (Cin, kH, kW) already matches the
    # cin-major / tap-minor column layout -> no transpose needed.
    Coutp = _round_up(Cout, 8)
    wt = weight.astype(jnp.float32).reshape(Cout, Cin * K)
    wt = jnp.pad(wt, ((0, Coutp - Cout), (0, CKp - Cin * K))).astype(jnp.bfloat16)
    b_col = jnp.pad(bias.astype(jnp.float32), (0, Coutp - Cout)).reshape(Coutp, 1)

    # VMEM budget (double-buffered streamed tiles + resident weight/bias).
    vmem_need = (2 * CKp * TP * 2            # col tile, bf16, 2 buffers
                 + 2 * Coutp * TP * 4        # out tile, f32, 2 buffers
                 + Coutp * CKp * 2           # resident conv weight, bf16
                 + Coutp * 4)                # bias
    vmem_limit = int(min(max(2 * vmem_need, 32 * 1024 * 1024), 96 * 1024 * 1024))
    # TODO(synk): per-generation tuning (pl.Buffered(3) on the col spec / TP up
    # to 1024 on v5e/v6e's 128 MiB VMEM; shrink TP for very large Cin*K on v7x).

    grid = (N, Pp // TP)
    out = pl.pallas_call(
        _mdc_kernel,
        grid=grid,
        in_specs=[
            pl.BlockSpec((1, CKp, TP), lambda n, p: (n, 0, p)),   # streamed slab
            pl.BlockSpec((Coutp, CKp), lambda n, p: (0, 0)),      # resident weight
            pl.BlockSpec((Coutp, 1), lambda n, p: (0, 0)),        # resident bias
        ],
        out_specs=pl.BlockSpec((1, Coutp, TP), lambda n, p: (n, 0, p)),
        out_shape=jax.ShapeDtypeStruct((N, Coutp, Pp), jnp.float32),
        compiler_params=pltpu.CompilerParams(
            dimension_semantics=("parallel", "parallel"),
            vmem_limit_bytes=vmem_limit),
    )(col, wt, b_col)

    return out[:, :Cout, :P].reshape(N, Cout, Ho, Wo)


# ---------------------------------------------------------------------------
# Independent pure-JAX reference (per-tap loop, simple clipped gathers)
# ---------------------------------------------------------------------------
def _bilinear_sample(x, py, px):
    """Zero-padded bilinear sampling with mmcv DCNv2 border semantics."""
    N, Cin, H, W = x.shape
    f32 = jnp.float32
    y0 = jnp.floor(py)
    x0 = jnp.floor(px)
    ly = py - y0
    lx = px - x0
    xf = x.reshape(N, Cin, H * W).astype(f32)

    def fetch(yi, xi):
        valid = ((yi >= 0) & (yi <= H - 1) & (xi >= 0) & (xi <= W - 1)).astype(f32)
        yc = jnp.clip(yi, 0, H - 1).astype(jnp.int32)
        xc = jnp.clip(xi, 0, W - 1).astype(jnp.int32)
        idx = (yc * W + xc).reshape(N, -1)
        g = jax.vmap(lambda a, ind: a[:, ind])(xf, idx)        # (N, Cin, Ho*Wo)
        return g.reshape(N, Cin, *py.shape[1:]) * valid[:, None]

    v = (((1 - ly) * (1 - lx))[:, None] * fetch(y0, x0)
         + ((1 - ly) * lx)[:, None] * fetch(y0, x0 + 1)
         + (ly * (1 - lx))[:, None] * fetch(y0 + 1, x0)
         + (ly * lx)[:, None] * fetch(y0 + 1, x0 + 1))
    inb = ((py > -1) & (px > -1) & (py < H) & (px < W)).astype(f32)
    return v * inb[:, None]


def _reference(x, offset, mask, weight, bias, stride, padding, dilation):
    N, Cin, H, W = x.shape
    Cout, _, kH, kW = weight.shape
    K = kH * kW
    Ho = (H + 2 * padding - dilation * (kH - 1) - 1) // stride + 1
    Wo = (W + 2 * padding - dilation * (kW - 1) - 1) // stride + 1
    off = offset.reshape(N, K, 2, Ho, Wo).astype(jnp.float32)
    msk = mask.reshape(N, K, Ho, Wo).astype(jnp.float32)
    ho = jnp.arange(Ho)
    wo = jnp.arange(Wo)
    out = jnp.zeros((N, Cout, Ho, Wo), jnp.float32)
    for i in range(kH):
        for j in range(kW):
            k = i * kW + j
            py = (ho * stride - padding + i * dilation)[None, :, None] + off[:, k, 0]
            px = (wo * stride - padding + j * dilation)[None, None, :] + off[:, k, 1]
            val = _bilinear_sample(x, py, px) * msk[:, k][:, None]
            out = out + jnp.einsum('oc,nchw->nohw',
                                   weight[:, :, i, j].astype(jnp.float32), val)
    return out + bias.reshape(1, Cout, 1, 1)


if __name__ == "__main__":
    key = jax.random.PRNGKey(0)
    N, Cin, H, W = 2, 4, 16, 16
    Cout, k = 8, 3
    stride, padding, dilation = 1, 1, 1
    dg = 1

    k_x, k_off, k_msk, k_w = jax.random.split(key, 4)

    # deterministic parameter init, mirroring ModulatedDeformConv.init_weights()
    n_fan = Cin * k * k
    stdv = 1.0 / math.sqrt(n_fan)
    weight = jax.random.uniform(k_w, (Cout, Cin, k, k), jnp.float32, -stdv, stdv)
    bias = jnp.zeros((Cout,), jnp.float32)

    x = jax.random.normal(k_x, (N, Cin, H, W), jnp.float32)
    offset = 0.5 * jax.random.normal(k_off, (N, 2 * dg * k * k, H, W), jnp.float32)
    mask = jax.nn.sigmoid(jax.random.normal(k_msk, (N, dg * k * k, H, W), jnp.float32))

    out = modulated_deform_conv(x, offset, mask, weight, bias,
                                stride=stride, padding=padding, dilation=dilation,
                                groups=1, deformable_groups=dg)
    out = jax.block_until_ready(out)

    ref = _reference(x, offset, mask, weight, bias, stride, padding, dilation)
    assert out.shape == (N, Cout, H, W)
    max_err = float(jnp.max(jnp.abs(out - ref)))
    # bf16 MXU operands (combine itself is f32 in prep) => modest tolerance
    assert jnp.allclose(out, ref, atol=2e-2, rtol=2e-2), f"max abs err {max_err}"

    print("KERNEL_OK")
</pallas_src>

<mosaic_0001>
module attributes {stable_mosaic.version = 11 : i64} {
  func.func @_mdc_kernel(%arg0: i32, %arg1: i32, %arg2: memref<1x48x256xbf16, #tpu.memory_space<vmem>>, %arg3: memref<8x48xbf16, #tpu.memory_space<vmem>>, %arg4: memref<8x1xf32, #tpu.memory_space<vmem>>, %arg5: memref<1x8x256xf32, #tpu.memory_space<vmem>>) attributes {dimension_semantics = [#tpu.dimension_semantics<parallel>, #tpu.dimension_semantics<parallel>], iteration_bounds = array<i64: 2, 1>, scalar_prefetch = 0 : i64, scratch_operands = 0 : i64, tpu.core_type = #tpu.core_type<tc>, window_params = [{transform_indices = @transform_0, window_bounds = array<i64: 1, 48, 256>}, {pipeline_mode = #tpu.pipeline_mode<synchronous>, transform_indices = @transform_1, window_bounds = array<i64: 8, 48>}, {pipeline_mode = #tpu.pipeline_mode<synchronous>, transform_indices = @transform_2, window_bounds = array<i64: 8, 1>}, {transform_indices = @transform_3, window_bounds = array<i64: 1, 8, 256>}]} {
    %c0 = arith.constant 0 : index
    %c0_0 = arith.constant 0 : index
    %0 = vector.load %arg3[%c0, %c0_0] : memref<8x48xbf16, #tpu.memory_space<vmem>>, vector<8x48xbf16>
    %c0_1 = arith.constant 0 : index
    %c0_2 = arith.constant 0 : index
    %c0_3 = arith.constant 0 : index
    %1 = vector.load %arg2[%c0_1, %c0_2, %c0_3] : memref<1x48x256xbf16, #tpu.memory_space<vmem>>, vector<1x48x256xbf16>
    %2 = vector.shape_cast %1 : vector<1x48x256xbf16> to vector<48x256xbf16>
    %cst = arith.constant dense<0.000000e+00> : vector<8x256xf32>
    %3 = tpu.matmul %0, %2, %cst {dimension_numbers = #tpu.dot_dimension_numbers<[1], [0], [0], [1], [0, 0, 1, 1], [], []>} : vector<8x48xbf16>, vector<48x256xbf16>, vector<8x256xf32> -> vector<8x256xf32>
    %c0_4 = arith.constant 0 : index
    %c0_5 = arith.constant 0 : index
    %4 = vector.load %arg4[%c0_4, %c0_5] : memref<8x1xf32, #tpu.memory_space<vmem>>, vector<8x1xf32>
    %5 = vector.broadcast %4 : vector<8x1xf32> to vector<8x256xf32>
    %6 = arith.addf %3, %5 : vector<8x256xf32>
    %c0_6 = arith.constant 0 : index
    %c0_7 = arith.constant 0 : index
    %c0_8 = arith.constant 0 : index
    %7 = vector.load %arg5[%c0_6, %c0_7, %c0_8] : memref<1x8x256xf32, #tpu.memory_space<vmem>>, vector<1x8x256xf32>
    %8 = vector.shape_cast %7 : vector<1x8x256xf32> to vector<8x256xf32>
    %9 = vector.shape_cast %6 : vector<8x256xf32> to vector<1x8x256xf32>
    tpu.vector_store %arg5[%c0_6, %c0_7, %c0_8], %9 {strides = array<i32>} : memref<1x8x256xf32, #tpu.memory_space<vmem>>, vector<1x8x256xf32>,
    return
  }
  func.func @transform_0(%arg0: i32, %arg1: i32) -> (i32, i32, i32) {
    %c0_i32 = arith.constant 0 : i32
    %c0_i32_0 = arith.constant 0 : i32
    return %arg0, %c0_i32, %arg1 : i32, i32, i32
  }
  func.func @transform_1(%arg0: i32, %arg1: i32) -> (i32, i32) {
    %c0_i32 = arith.constant 0 : i32
    %c0_i32_0 = arith.constant 0 : i32
    %c0_i32_1 = arith.constant 0 : i32
    return %c0_i32, %c0_i32_0 : i32, i32
  }
  func.func @transform_2(%arg0: i32, %arg1: i32) -> (i32, i32) {
    %c0_i32 = arith.constant 0 : i32
    %c0_i32_0 = arith.constant 0 : i32
    %c0_i32_1 = arith.constant 0 : i32
    return %c0_i32, %c0_i32_0 : i32, i32
  }
  func.func @transform_3(%arg0: i32, %arg1: i32) -> (i32, i32, i32) {
    %c0_i32 = arith.constant 0 : i32
    %c0_i32_0 = arith.constant 0 : i32
    return %arg0, %c0_i32, %arg1 : i32, i32, i32
  }
}

</mosaic_0001>

<bundles_post_ra>
// kernel: mul.53
= control target key start
LH: loop header
LB: loop body
LE: loop exit
PB: predicated region body
PF: predicated region fallthrough
CT: control target
= control target key end

     0   :  { %s50_s6 = smov 3  ;;  %s53_s7 = smov 12  ;;  %vm55_vm0 = vcmask 1043458   ;;  %vm60_vm1 = vcmask 1045508   ;;  %vm65_vm2 = vcmask 1047558   ;;  %vm4_vm3 = vcmask 1047556   ;;  %s1981_s0 = inlined_call_operand.vmem [shape: f32[2,9,16,16], index: 0, kind: input, shape index: {}]   ;;  %s1982_s1 = inlined_call_operand.vmem [shape: f32[2,2304], index: 1, kind: output, shape index: {}]  }
   0x1   :  { %v1089_v0 = vld [vmem:[%s1981_s0 + $0x7] ss:$144 sm:%s50_s6]   ;;  %v1090_v1 = vld [vmem:[%s1981_s0 - $0x111] ss:$144 sm:%s53_s7]   ;;  %s58_s12 = smov 48  ;;  %s63_s13 = smov 192 }
   0x2   :  { %v56_v2 = vsel %vm55_vm0, %v1090_v1, %v1089_v0  ;;  %v1091_v3 = vld [vmem:[%s1981_s0 - $0x229] ss:$144 sm:%s58_s12]   ;;  %v1092_v4 = vld [vmem:[%s1981_s0 - $0x341] ss:$144 sm:%s63_s13]   ;;  %s107_s18 = smov 3  ;;  %s110_s21 = smov 12 }
   0x3   :  { %v61_v5 = vsel %vm60_vm1, %v1091_v3, %v56_v2  ;;  %v1097_v6 = vld [vmem:[%s1981_s0 + $0x47] ss:$144 sm:%s107_s18]   ;;  %s115_s22 = smov 48  ;;  %v1098_v8 = vld [vmem:[%s1981_s0 - $0xd1] ss:$144 sm:%s110_s21]   ;;  %s120_s27 = smov 192 }
   0x4   :  { %v66_v7 = vsel %vm65_vm2, %v1092_v4, %v61_v5  ;;  %v1099_v9 = vld [vmem:[%s1981_s0 - $0x1e9] ss:$144 sm:%s115_s22]   ;;  %s78_s28 = smov 3  ;;  %s1239_s29 = smov 112   ;;  %v113_v10 = vsel %vm55_vm0, %v1098_v8, %v1097_v6  ;;  %v1100_v11 = vld [vmem:[%s1981_s0 - $0x301] ss:$144 sm:%s120_s27]  }
   0x5   :  { %67 = vrot.lane.b32.xlu0 %v66_v7, %s1239_s29  ;;  %s81_s3 = smov 12  ;;  %s86_s4 = smov 48  ;;  %v118_v12 = vsel %vm60_vm1, %v1099_v9, %v113_v10  ;;  %v1093_v13 = vld [vmem:[%s1981_s0 + $0x27] ss:$144 sm:%s78_s28]   ;;  %vm6_vm4 = vcmask 130048   ;;  %vm69_vm5 = vcmask 1048448  }
   0x6   :  { %v1094_v14 = vld [vmem:[%s1981_s0 - $0xf1] ss:$144 sm:%s81_s3]   ;;  %s91_s9 = smov 192  ;;  %s136_s10 = smov 3  ;;  %v123_v15 = vsel %vm65_vm2, %v1100_v11, %v118_v12  ;;  %v1095_v17 = vld [vmem:[%s1981_s0 - $0x209] ss:$144 sm:%s86_s4]  }
   0x7   :  { %v84_v16 = vsel %vm55_vm0, %v1094_v14, %v1093_v13  ;;  %v1096_v18 = vld [vmem:[%s1981_s0 - $0x321] ss:$144 sm:%s91_s9]   ;;  %s139_s15 = smov 12  ;;  %s144_s16 = smov 48  ;;  %124 = vrot.lane.b32.xlu1 %v123_v15, %s1239_s29  ;;  %vm199_vm6 = vcmask 917248   ;;  %vm329_vm7 = vcmask 786048  }
   0x8   :  { %v89_v19 = vsel %vm60_vm1, %v1095_v17, %v84_v16  ;;  %v1101_v20 = vld [vmem:[%s1981_s0 + $0x67] ss:$144 sm:%s136_s10]   ;;  %s149_s19 = smov 192  ;;  %s165_s20 = smov 3  ;;  %v1102_v22 = vld [vmem:[%s1981_s0 - $0xb1] ss:$144 sm:%s139_s15]  }
   0x9   :  { %v94_v21 = vsel %vm65_vm2, %v1096_v18, %v89_v19  ;;  %v1103_v23 = vld [vmem:[%s1981_s0 - $0x1c9] ss:$144 sm:%s144_s16]   ;;  %s168_s25 = smov 12  ;;  %s180_s26 = smov 3  ;;  %v142_v24 = vsel %vm55_vm0, %v1102_v22, %v1101_v20  ;;  %v1104_v25 = vld [vmem:[%s1981_s0 - $0x2e1] ss:$144 sm:%s149_s19]  }
   0xa   :  { %95 = vrot.lane.b32.xlu0 %v94_v21, %s1239_s29  ;;  %s183_s30 = smov 12  ;;  %s188_s2 = smov 48  ;;  %v147_v26 = vsel %vm60_vm1, %v1103_v23, %v142_v24  ;;  %v1105_v27 = vld [vmem:[%s1981_s0 + $0x87] ss:$144 sm:%s165_s20]   ;;  %vm459_vm8 = vcmask 654848   ;;  %vm589_vm9 = vcmask 523648  }
   0xb   :  { %v1106_v28 = vld [vmem:[%s1981_s0 - $0x91] ss:$144 sm:%s168_s25]   ;;  %s193_s7 = smov 192  ;;  %v152_v29 = vsel %vm65_vm2, %v1104_v25, %v147_v26  ;;  %v1107_v31 = vld [vmem:[%s1981_s0 + $0x6] ss:$144 sm:%s180_s26]   ;;  %s208_s12 = smov 3 }
   0xc   :  { %v171_v30 = vsel %vm55_vm0, %v1106_v28, %v1105_v27  ;;  %v1108_v32 = vld [vmem:[%s1981_s0 - $0x112] ss:$144 sm:%s183_s30]   ;;  %s211_s13 = smov 12  ;;  %153 = vrot.lane.b32.xlu1 %v152_v29, %s1239_s29  ;;  %s216_s16 = smov 48  ;;  %vm719_vm10 = vcmask 392448   ;;  %vm849_vm11 = vcmask 261248  }
   0xd   :  { %v186_v33 = vsel %vm55_vm0, %v1108_v32, %v1107_v31  ;;  %v1109_v34 = vld [vmem:[%s1981_s0 - $0x22a] ss:$144 sm:%s188_s2]   ;;  %s221_s17 = smov 192  ;;  %v1110_v36 = vld [vmem:[%s1981_s0 - $0x342] ss:$144 sm:%s193_s7]   ;;  %s237_s19 = smov 3 }
   0xe   :  { %172 = vrot.lane.b32.xlu0 %v171_v30, %s1239_s29  ;;  %v191_v35 = vsel %vm60_vm1, %v1109_v34, %v186_v33  ;;  %v1111_v38 = vld [vmem:[%s1981_s0 + $0x26] ss:$144 sm:%s208_s12]   ;;  %s240_s24 = smov 12  ;;  %s245_s25 = smov 48 }
   0xf   :  { %v196_v37 = vsel %vm65_vm2, %v1110_v36, %v191_v35  ;;  %v1112_v39 = vld [vmem:[%s1981_s0 - $0xf2] ss:$144 sm:%s211_s13]   ;;  %v1113_v41 = vld [vmem:[%s1981_s0 - $0x20a] ss:$144 sm:%s216_s16]   ;;  %s250_s2 = smov 192  ;;  %s1240_s3 = smov 96  }
  0x10   :  { %v214_v40 = vsel %vm55_vm0, %v1112_v39, %v1111_v38  ;;  %v1114_v42 = vld [vmem:[%s1981_s0 - $0x322] ss:$144 sm:%s221_s17]   ;;  %197 = vrot.lane.b32.xlu1 %v196_v37, %s1240_s3  ;;  %s266_s6 = smov 3  ;;  %s269_s7 = smov 12 }
  0x11   :  { %v219_v43 = vsel %vm60_vm1, %v1113_v41, %v214_v40  ;;  %v1115_v44 = vld [vmem:[%s1981_s0 + $0x46] ss:$144 sm:%s237_s19]   ;;  %v1116_v46 = vld [vmem:[%s1981_s0 - $0xd2] ss:$144 sm:%s240_s24]   ;;  %s274_s12 = smov 48  ;;  %s279_s13 = smov 192 }
  0x12   :  { %v224_v45 = vsel %vm65_vm2, %v1114_v42, %v219_v43  ;;  %v1117_v47 = vld [vmem:[%s1981_s0 - $0x1ea] ss:$144 sm:%s245_s25]   ;;  %v243_v48 = vsel %vm55_vm0, %v1116_v46, %v1115_v44  ;;  %v1118_v49 = vld [vmem:[%s1981_s0 - $0x302] ss:$144 sm:%s250_s2]   ;;  %s295_s16 = smov 3  ;;  %s298_s20 = smov 12 }
  0x13   :  { %225 = vrot.lane.b32.xlu0 %v224_v45, %s1240_s3  ;;  %v248_v50 = vsel %vm60_vm1, %v1117_v47, %v243_v48  ;;  %v1119_v51 = vld [vmem:[%s1981_s0 + $0x66] ss:$144 sm:%s266_s6]   ;;  %s310_s21 = smov 3  ;;  %s313_s26 = smov 12 }
  0x14   :  { %v1120_v52 = vld [vmem:[%s1981_s0 - $0xb2] ss:$144 sm:%s269_s7]   ;;  %v253_v53 = vsel %vm65_vm2, %v1118_v49, %v248_v50  ;;  %v1121_v55 = vld [vmem:[%s1981_s0 - $0x1ca] ss:$144 sm:%s274_s12]   ;;  %s318_s30 = smov 48  ;;  %s323_s2 = smov 192 }
  0x15   :  { %v272_v54 = vsel %vm55_vm0, %v1120_v52, %v1119_v51  ;;  %v1122_v56 = vld [vmem:[%s1981_s0 - $0x2e2] ss:$144 sm:%s279_s13]   ;;  %254 = vrot.lane.b32.xlu1 %v253_v53, %s1240_s3  ;;  %s338_s8 = smov 3  ;;  %s341_s11 = smov 12 }
  0x16   :  { %v277_v57 = vsel %vm60_vm1, %v1121_v55, %v272_v54  ;;  %v1123_v58 = vld [vmem:[%s1981_s0 + $0x86] ss:$144 sm:%s295_s16]   ;;  %v1124_v60 = vld [vmem:[%s1981_s0 - $0x92] ss:$144 sm:%s298_s20]   ;;  %s346_s12 = smov 48  ;;  %s351_s17 = smov 192 }
  0x17   :  { %v282_v59 = vsel %vm65_vm2, %v1122_v56, %v277_v57  ;;  %v1125_v61 = vld [vmem:[%s1981_s0 + $0x5] ss:$144 sm:%s310_s21]   ;;  %v301_v62 = vsel %vm55_vm0, %v1124_v60, %v1123_v58  ;;  %v1126_v63 = vld [vmem:[%s1981_s0 - $0x113] ss:$144 sm:%s313_s26]   ;;  %s367_s18 = smov 3  ;;  %s370_s19 = smov 12 }
  0x18   :  { %283 = vrot.lane.b32.xlu0 %v282_v59, %s1240_s3  ;;  %v316_v0 = vsel %vm55_vm0, %v1126_v63, %v1125_v61  ;;  %v1127_v1 = vld [vmem:[%s1981_s0 - $0x22b] ss:$144 sm:%s318_s30]   ;;  %s375_s24 = smov 48  ;;  %s380_s25 = smov 192 }
  0x19   :  { %v1128_v2 = vld [vmem:[%s1981_s0 - $0x343] ss:$144 sm:%s323_s2]   ;;  %302 = vrot.lane.b32.xlu1 %v301_v62, %s1240_s3  ;;  %v321_v3 = vsel %vm60_vm1, %v1127_v1, %v316_v0  ;;  %s1241_s26 = smov 80   ;;  %s396_s30 = smov 3 }
  0x1a   :  { %v1129_v4 = vld [vmem:[%s1981_s0 + $0x25] ss:$144 sm:%s338_s8]   ;;  %v326_v5 = vsel %vm65_vm2, %v1128_v2, %v321_v3  ;;  %v1130_v6 = vld [vmem:[%s1981_s0 - $0xf3] ss:$144 sm:%s341_s11]   ;;  %s399_s7 = smov 12  ;;  %s404_s8 = smov 48 }
  0x1b   :  { %v1131_v7 = vld [vmem:[%s1981_s0 - $0x20b] ss:$144 sm:%s346_s12]   ;;  %v344_v8 = vsel %vm55_vm0, %v1130_v6, %v1129_v4  ;;  %v1132_v9 = vld [vmem:[%s1981_s0 - $0x323] ss:$144 sm:%s351_s17]   ;;  %s409_s13 = smov 192  ;;  %s425_s16 = smov 3 }
  0x1c   :  { %327 = vrot.lane.b32.xlu0 %v326_v5, %s1241_s26  ;;  %v349_v10 = vsel %vm60_vm1, %v1131_v7, %v344_v8  ;;  %v1133_v11 = vld [vmem:[%s1981_s0 + $0x45] ss:$144 sm:%s367_s18]   ;;  %s428_s17 = smov 12  ;;  %s440_s20 = smov 3 }
  0x1d   :  { %v1134_v12 = vld [vmem:[%s1981_s0 - $0xd3] ss:$144 sm:%s370_s19]   ;;  %v354_v13 = vsel %vm65_vm2, %v1132_v9, %v349_v10  ;;  %v1135_v15 = vld [vmem:[%s1981_s0 - $0x1eb] ss:$144 sm:%s375_s24]   ;;  %s443_s21 = smov 12  ;;  %s448_s24 = smov 48 }
  0x1e   :  { %v373_v14 = vsel %vm55_vm0, %v1134_v12, %v1133_v11  ;;  %v1136_v16 = vld [vmem:[%s1981_s0 - $0x303] ss:$144 sm:%s380_s25]   ;;  %355 = vrot.lane.b32.xlu1 %v354_v13, %s1241_s26  ;;  %s453_s2 = smov 192  ;;  %s471_s9 = smov 12 }
  0x1f   :  { %v378_v17 = vsel %vm60_vm1, %v1135_v15, %v373_v14  ;;  %v1137_v18 = vld [vmem:[%s1981_s0 + $0x65] ss:$144 sm:%s396_s30]   ;;  %v1138_v20 = vld [vmem:[%s1981_s0 - $0xb3] ss:$144 sm:%s399_s7]   ;;  %s476_s12 = smov 48  ;;  %s497_s15 = smov 3 }
  0x20   :  { %v383_v19 = vsel %vm65_vm2, %v1136_v16, %v378_v17  ;;  %v1139_v21 = vld [vmem:[%s1981_s0 - $0x1cb] ss:$144 sm:%s404_s8]   ;;  %v402_v22 = vsel %vm55_vm0, %v1138_v20, %v1137_v18  ;;  %v1140_v23 = vld [vmem:[%s1981_s0 - $0x2e3] ss:$144 sm:%s409_s13]   ;;  %s468_s8 = smov 3  ;;  %s481_s13 = smov 192 }
  0x21   :  { %384 = vrot.lane.b32.xlu0 %v383_v19, %s1241_s26  ;;  %v407_v24 = vsel %vm60_vm1, %v1139_v21, %v402_v22  ;;  %v1141_v25 = vld [vmem:[%s1981_s0 + $0x85] ss:$144 sm:%s425_s16]   ;;  %s500_s18 = smov 12  ;;  %s505_s19 = smov 48 }
  0x22   :  { %v1142_v26 = vld [vmem:[%s1981_s0 - $0x93] ss:$144 sm:%s428_s17]   ;;  %v412_v27 = vsel %vm65_vm2, %v1140_v23, %v407_v24  ;;  %v1143_v29 = vld [vmem:[%s1981_s0 + $0x4] ss:$144 sm:%s440_s20]   ;;  %s1242_s25 = smov 64   ;;  %s526_s30 = smov 3 }
  0x23   :  { %v431_v28 = vsel %vm55_vm0, %v1142_v26, %v1141_v25  ;;  %v1144_v30 = vld [vmem:[%s1981_s0 - $0x114] ss:$144 sm:%s443_s21]   ;;  %413 = vrot.lane.b32.xlu1 %v412_v27, %s1241_s26  ;;  %s558_s16 = smov 12  ;;  %s570_s17 = smov 3 }
  0x24   :  { %v446_v31 = vsel %vm55_vm0, %v1144_v30, %v1143_v29  ;;  %v1145_v32 = vld [vmem:[%s1981_s0 - $0x22c] ss:$144 sm:%s448_s24]   ;;  %v1146_v34 = vld [vmem:[%s1981_s0 - $0x344] ss:$144 sm:%s453_s2]   ;;  %s510_s24 = smov 192  ;;  %s529_s2 = smov 12 }
  0x25   :  { %432 = vrot.lane.b32.xlu0 %v431_v28, %s1241_s26  ;;  %v451_v33 = vsel %vm60_vm1, %v1145_v32, %v446_v31  ;;  %v1147_v36 = vld [vmem:[%s1981_s0 + $0x24] ss:$144 sm:%s468_s8]   ;;  %s534_s8 = smov 48  ;;  %s573_s20 = smov 12 }
  0x26   :  { %v456_v35 = vsel %vm65_vm2, %v1146_v34, %v451_v33  ;;  %v1148_v37 = vld [vmem:[%s1981_s0 - $0xf4] ss:$144 sm:%s471_s9]   ;;  %v1149_v39 = vld [vmem:[%s1981_s0 - $0x20c] ss:$144 sm:%s476_s12]   ;;  %s539_s9 = smov 192  ;;  %s555_s12 = smov 3 }
  0x27   :  { %v474_v38 = vsel %vm55_vm0, %v1148_v37, %v1147_v36  ;;  %v1150_v40 = vld [vmem:[%s1981_s0 - $0x324] ss:$144 sm:%s481_s13]   ;;  %457 = vrot.lane.b32.xlu1 %v456_v35, %s1242_s25  ;;  %s578_s23 = smov 48  ;;  %s598_s4 = smov 3 }
  0x28   :  { %v479_v41 = vsel %vm60_vm1, %v1149_v39, %v474_v38  ;;  %v1151_v42 = vld [vmem:[%s1981_s0 + $0x44] ss:$144 sm:%s497_s15]   ;;  %v1152_v44 = vld [vmem:[%s1981_s0 - $0xd4] ss:$144 sm:%s500_s18]   ;;  %s601_s7 = smov 12  ;;  %s611_s13 = smov 192 }
  0x29   :  { %v484_v43 = vsel %vm65_vm2, %v1150_v40, %v479_v41  ;;  %v1153_v45 = vld [vmem:[%s1981_s0 - $0x1ec] ss:$144 sm:%s505_s19]   ;;  %v503_v46 = vsel %vm55_vm0, %v1152_v44, %v1151_v42  ;;  %v1154_v47 = vld [vmem:[%s1981_s0 - $0x304] ss:$144 sm:%s510_s24]   ;;  %s583_s24 = smov 192  ;;  %s627_s14 = smov 3 }
  0x2a   :  { %485 = vrot.lane.b32.xlu0 %v484_v43, %s1242_s25  ;;  %v508_v48 = vsel %vm60_vm1, %v1153_v45, %v503_v46  ;;  %v1155_v49 = vld [vmem:[%s1981_s0 + $0x64] ss:$144 sm:%s526_s30]   ;;  %s630_s15 = smov 12  ;;  %s635_s18 = smov 48 }
  0x2b   :  { %v1156_v50 = vld [vmem:[%s1981_s0 - $0xb4] ss:$144 sm:%s529_s2]   ;;  %v513_v51 = vsel %vm65_vm2, %v1154_v47, %v508_v48  ;;  %v1157_v53 = vld [vmem:[%s1981_s0 - $0x1cc] ss:$144 sm:%s534_s8]   ;;  %s606_s8 = smov 48  ;;  %s640_s19 = smov 192 }
  0x2c   :  { %v532_v52 = vsel %vm55_vm0, %v1156_v50, %v1155_v49  ;;  %v1158_v54 = vld [vmem:[%s1981_s0 - $0x2e4] ss:$144 sm:%s539_s9]   ;;  %514 = vrot.lane.b32.xlu1 %v513_v51, %s1242_s25  ;;  %s659_s2 = smov 12  ;;  %s669_s9 = smov 192 }
  0x2d   :  { %v537_v55 = vsel %vm60_vm1, %v1157_v53, %v532_v52  ;;  %v1159_v56 = vld [vmem:[%s1981_s0 + $0x84] ss:$144 sm:%s555_s12]   ;;  %v1160_v58 = vld [vmem:[%s1981_s0 - $0x94] ss:$144 sm:%s558_s16]   ;;  %s685_s12 = smov 3  ;;  %s700_s16 = smov 3 }
  0x2e   :  { %v542_v57 = vsel %vm65_vm2, %v1158_v54, %v537_v55  ;;  %v1161_v59 = vld [vmem:[%s1981_s0 + $0x3] ss:$144 sm:%s570_s17]   ;;  %v561_v60 = vsel %vm55_vm0, %v1160_v58, %v1159_v56  ;;  %v1162_v61 = vld [vmem:[%s1981_s0 - $0x115] ss:$144 sm:%s573_s20]   ;;  %s1243_s20 = smov 48   ;;  %s703_s17 = smov 12 }
  0x2f   :  { %543 = vrot.lane.b32.xlu0 %v542_v57, %s1242_s25  ;;  %v576_v62 = vsel %vm55_vm0, %v1162_v61, %v1161_v59  ;;  %v1163_v63 = vld [vmem:[%s1981_s0 - $0x22d] ss:$144 sm:%s578_s23]   ;;  %s656_s23 = smov 3  ;;  %s731_s5 = smov 12 }
  0x30   :  { %v1164_v0 = vld [vmem:[%s1981_s0 - $0x345] ss:$144 sm:%s583_s24]   ;;  %562 = vrot.lane.b32.xlu1 %v561_v60, %s1242_s25  ;;  %v581_v1 = vsel %vm60_vm1, %v1163_v63, %v576_v62  ;;  %s713_s24 = smov 192  ;;  %s757_s11 = smov 3 }
  0x31   :  { %v1165_v2 = vld [vmem:[%s1981_s0 + $0x23] ss:$144 sm:%s598_s4]   ;;  %v586_v3 = vsel %vm65_vm2, %v1164_v0, %v581_v1  ;;  %v1166_v4 = vld [vmem:[%s1981_s0 - $0xf5] ss:$144 sm:%s601_s7]   ;;  %s664_s4 = smov 48  ;;  %s833_s25 = smov 12 }
  0x32   :  { %v1167_v5 = vld [vmem:[%s1981_s0 - $0x20d] ss:$144 sm:%s606_s8]   ;;  %v604_v6 = vsel %vm55_vm0, %v1166_v4, %v1165_v2  ;;  %v1168_v7 = vld [vmem:[%s1981_s0 - $0x325] ss:$144 sm:%s611_s13]   ;;  %s688_s13 = smov 12  ;;  %s736_s8 = smov 48 }
  0x33   :  { %587 = vrot.lane.b32.xlu0 %v586_v3, %s1243_s20  ;;  %v609_v8 = vsel %vm60_vm1, %v1167_v5, %v604_v6  ;;  %v1169_v9 = vld [vmem:[%s1981_s0 + $0x43] ss:$144 sm:%s627_s14]   ;;  %s760_s14 = smov 12  ;;  %s843_s3 = smov 192 }
  0x34   :  { %v1170_v10 = vld [vmem:[%s1981_s0 - $0xd5] ss:$144 sm:%s630_s15]   ;;  %v614_v11 = vsel %vm65_vm2, %v1168_v7, %v609_v8  ;;  %v1171_v13 = vld [vmem:[%s1981_s0 - $0x1ed] ss:$144 sm:%s635_s18]   ;;  %s708_s18 = smov 48  ;;  %s765_s15 = smov 48 }
  0x35   :  { %v633_v12 = vsel %vm55_vm0, %v1170_v10, %v1169_v9  ;;  %v1172_v14 = vld [vmem:[%s1981_s0 - $0x305] ss:$144 sm:%s640_s19]   ;;  %615 = vrot.lane.b32.xlu1 %v614_v11, %s1243_s20  ;;  %s1244_s19 = smov 32   ;;  %v2_v55 = vld [vmem:[%s1981_s0] ss:$8 sm:$0xf]  }
  0x36   :  { %v638_v15 = vsel %vm60_vm1, %v1171_v13, %v633_v12  ;;  %v1173_v16 = vld [vmem:[%s1981_s0 + $0x63] ss:$144 sm:%s656_s23]   ;;  %v1174_v18 = vld [vmem:[%s1981_s0 - $0xb5] ss:$144 sm:%s659_s2]   ;;  %s786_s23 = smov 3  ;;  %s858_s30 = smov 3 }
  0x37   :  { %v643_v17 = vsel %vm65_vm2, %v1172_v14, %v638_v15  ;;  %v1175_v19 = vld [vmem:[%s1981_s0 - $0x1cd] ss:$144 sm:%s664_s4]   ;;  %v662_v20 = vsel %vm55_vm0, %v1174_v18, %v1173_v16  ;;  %v1176_v21 = vld [vmem:[%s1981_s0 - $0x2e5] ss:$144 sm:%s669_s9]   ;;  %s728_s4 = smov 3  ;;  %s741_s9 = smov 192 }
  0x38   :  { %644 = vrot.lane.b32.xlu0 %v643_v17, %s1243_s20  ;;  %v667_v22 = vsel %vm60_vm1, %v1175_v19, %v662_v20  ;;  %v1177_v23 = vld [vmem:[%s1981_s0 + $0x83] ss:$144 sm:%s685_s12]   ;;  %s861_s2 = smov 12  ;;  %s866_s6 = smov 48 }
  0x39   :  { %v1178_v24 = vld [vmem:[%s1981_s0 - $0x95] ss:$144 sm:%s688_s13]   ;;  %v672_v25 = vsel %vm65_vm2, %v1176_v21, %v667_v22  ;;  %v1179_v27 = vld [vmem:[%s1981_s0 + $0x2] ss:$144 sm:%s700_s16]   ;;  %s830_s13 = smov 3  ;;  %s871_s12 = smov 192 }
  0x3a   :  { %v691_v26 = vsel %vm55_vm0, %v1178_v24, %v1177_v23  ;;  %v1180_v28 = vld [vmem:[%s1981_s0 - $0x116] ss:$144 sm:%s703_s17]   ;;  %673 = vrot.lane.b32.xlu1 %v672_v25, %s1243_s20  ;;  %s838_s17 = smov 48  ;;  %v3_v61 = vld [vmem:[%s1981_s0] ss:$8 sm:$0xf0]  }
  0x3b   :  { %v706_v29 = vsel %vm55_vm0, %v1180_v28, %v1179_v27  ;;  %v1181_v30 = vld [vmem:[%s1981_s0 - $0x22e] ss:$144 sm:%s708_s18]   ;;  %v1182_v32 = vld [vmem:[%s1981_s0 - $0x346] ss:$144 sm:%s713_s24]   ;;  %s770_s18 = smov 192  ;;  %s789_s24 = smov 12  ;;  %v5_v1 = vsel %vm4_vm3, %v3_v61, %v2_v55 }
  0x3c   :  { %692 = vrot.lane.b32.xlu0 %v691_v26, %s1243_s20  ;;  %v711_v31 = vsel %vm60_vm1, %v1181_v30, %v706_v29  ;;  %v1183_v34 = vld [vmem:[%s1981_s0 + $0x22] ss:$144 sm:%s728_s4]   ;;  %s794_s4 = smov 48  ;;  %s890_s26 = smov 12 }
  0x3d   :  { %v716_v33 = vsel %vm65_vm2, %v1182_v32, %v711_v31  ;;  %v1184_v35 = vld [vmem:[%s1981_s0 - $0xf6] ss:$144 sm:%s731_s5]   ;;  %v1185_v37 = vld [vmem:[%s1981_s0 - $0x20e] ss:$144 sm:%s736_s8]   ;;  %s799_s5 = smov 192  ;;  %s815_s8 = smov 3 }
  0x3e   :  { %v734_v36 = vsel %vm55_vm0, %v1184_v35, %v1183_v34  ;;  %v1186_v38 = vld [vmem:[%s1981_s0 - $0x326] ss:$144 sm:%s741_s9]   ;;  %717 = vrot.lane.b32.xlu1 %v716_v33, %s1244_s19  ;;  %s818_s9 = smov 12  ;;  %7 = vst.msk [vmem:[#allocation0] ss:$8 sm:$0xf] %vm6_vm4, %v5_v1  }
  0x3f   :  { %v739_v39 = vsel %vm60_vm1, %v1185_v37, %v734_v36  ;;  %v1187_v40 = vld [vmem:[%s1981_s0 + $0x42] ss:$144 sm:%s757_s11]   ;;  %v1188_v42 = vld [vmem:[%s1981_s0 - $0xd6] ss:$144 sm:%s760_s14]   ;;  %s900_s21 = smov 192  ;;  %s1245_s22 = smov 16  }
  0x40   :  { %v744_v41 = vsel %vm65_vm2, %v1186_v38, %v739_v39  ;;  %v1189_v43 = vld [vmem:[%s1981_s0 - $0x1ee] ss:$144 sm:%s765_s15]   ;;  %v763_v44 = vsel %vm55_vm0, %v1188_v42, %v1187_v40  ;;  %v1190_v45 = vld [vmem:[%s1981_s0 - $0x306] ss:$144 sm:%s770_s18]   ;;  %s895_s18 = smov 48  ;;  %s916_s27 = smov 3 }
  0x41   :  { %745 = vrot.lane.b32.xlu0 %v744_v41, %s1244_s19  ;;  %v768_v46 = vsel %vm60_vm1, %v1189_v43, %v763_v44  ;;  %v1191_v47 = vld [vmem:[%s1981_s0 + $0x62] ss:$144 sm:%s786_s23]   ;;  %v1084_v4 = vld [vmem:[%s1981_s0 + $0x80] ss:$8 sm:$0xf]   ;;  %s919_s7 = smov 12 }
  0x42   :  { %v1192_v48 = vld [vmem:[%s1981_s0 - $0xb6] ss:$144 sm:%s789_s24]   ;;  %v773_v49 = vsel %vm65_vm2, %v1190_v45, %v768_v46  ;;  %v1193_v51 = vld [vmem:[%s1981_s0 - $0x1ce] ss:$144 sm:%s794_s4]  }
  0x43   :  { %v792_v50 = vsel %vm55_vm0, %v1192_v48, %v1191_v47  ;;  %v1194_v52 = vld [vmem:[%s1981_s0 - $0x2e6] ss:$144 sm:%s799_s5]   ;;  %774 = vrot.lane.b32.xlu1 %v773_v49, %s1244_s19  ;;  %8 = vst.msk [vmem:[#allocation0] ss:$8 sm:$0xf0] %vm6_vm4, %v5_v1  }
  0x44   :  { %v797_v53 = vsel %vm60_vm1, %v1193_v51, %v792_v50  ;;  %v1195_v54 = vld [vmem:[%s1981_s0 + $0x82] ss:$144 sm:%s815_s8]   ;;  %v1196_v57 = vld [vmem:[%s1981_s0 - $0x96] ss:$144 sm:%s818_s9]   ;;  %s924_s8 = smov 48 }
  0x45   :  { %v802_v56 = vsel %vm65_vm2, %v1194_v52, %v797_v53  ;;  %v1197_v58 = vld [vmem:[%s1981_s0 + $0x1] ss:$144 sm:%s830_s13]   ;;  %v821_v59 = vsel %vm55_vm0, %v1196_v57, %v1195_v54  ;;  %v1198_v60 = vld [vmem:[%s1981_s0 - $0x117] ss:$144 sm:%s833_s25]   ;;  %s887_s13 = smov 3 }
  0x46   :  { %803 = vrot.lane.b32.xlu0 %v802_v56, %s1244_s19  ;;  %v836_v62 = vsel %vm55_vm0, %v1198_v60, %v1197_v58  ;;  %v1199_v63 = vld [vmem:[%s1981_s0 - $0x22f] ss:$144 sm:%s838_s17]   ;;  %v1085_v10 = vld [vmem:[%s1981_s0 + $0x80] ss:$8 sm:$0xf0]  }
  0x47   :  { %v1200_v0 = vld [vmem:[%s1981_s0 - $0x347] ss:$144 sm:%s843_s3]   ;;  %822 = vrot.lane.b32.xlu1 %v821_v59, %s1244_s19  ;;  %v841_v2 = vsel %vm60_vm1, %v1199_v63, %v836_v62  ;;  %v25_v14 = vsel %vm4_vm3, %v1085_v10, %v1084_v4  ;;  %v1082_v21 = vld [vmem:[%s1981_s0 + $0x40] ss:$8 sm:$0xf]  }
  0x48   :  { %v1201_v3 = vld [vmem:[%s1981_s0 + $0x21] ss:$144 sm:%s858_s30]   ;;  %v846_v5 = vsel %vm65_vm2, %v1200_v0, %v841_v2  ;;  %v1202_v6 = vld [vmem:[%s1981_s0 - $0xf7] ss:$144 sm:%s861_s2]  }
  0x49   :  { %v1203_v7 = vld [vmem:[%s1981_s0 - $0x20f] ss:$144 sm:%s866_s6]   ;;  %v864_v8 = vsel %vm55_vm0, %v1202_v6, %v1201_v3  ;;  %v1204_v9 = vld [vmem:[%s1981_s0 - $0x327] ss:$144 sm:%s871_s12]   ;;  %s929_s12 = smov 192 }
  0x4a   :  { %847 = vrot.lane.b32.xlu0 %v846_v5, %s1245_s22  ;;  %v869_v11 = vsel %vm60_vm1, %v1203_v7, %v864_v8  ;;  %v1205_v12 = vld [vmem:[%s1981_s0 + $0x41] ss:$144 sm:%s887_s13]   ;;  %s945_s13 = smov 3  ;;  %30 = vst.msk [vmem:[#allocation0 - $0xf] ss:$8 sm:$0x3c] %vm6_vm4, %v25_v14  }
  0x4b   :  { %v1206_v13 = vld [vmem:[%s1981_s0 - $0xd7] ss:$144 sm:%s890_s26]   ;;  %v874_v15 = vsel %vm65_vm2, %v1204_v9, %v869_v11  ;;  %v1207_v17 = vld [vmem:[%s1981_s0 - $0x1ef] ss:$144 sm:%s895_s18]   ;;  %s948_s26 = smov 12 }
  0x4c   :  { %v893_v16 = vsel %vm55_vm0, %v1206_v13, %v1205_v12  ;;  %v1208_v18 = vld [vmem:[%s1981_s0 - $0x307] ss:$144 sm:%s900_s21]   ;;  %28 = vst.msk [vmem:[#allocation0 + $0x80] ss:$8 sm:$0x3] %vm6_vm4, %v25_v14   ;;  %875 = vrot.lane.b32.xlu1 %v874_v15, %s1245_s22 }
  0x4d   :  { %32 = vst.msk [vmem:[#allocation0 - $0xf] ss:$8 sm:$0xc0] %vm6_vm4, %v25_v14   ;;  %v898_v19 = vsel %vm60_vm1, %v1207_v17, %v893_v16  ;;  %v1209_v20 = vld [vmem:[%s1981_s0 + $0x61] ss:$144 sm:%s916_s27]  }
  0x4e   :  { %v903_v22 = vsel %vm65_vm2, %v1208_v18, %v898_v19  ;;  %v1210_v23 = vld [vmem:[%s1981_s0 - $0xb7] ss:$144 sm:%s919_s7]   ;;  %v1211_v24 = vld [vmem:[%s1981_s0 - $0x1cf] ss:$144 sm:%s924_s8]  }
  0x4f   :  { %904 = vrot.lane.b32.xlu0 %v903_v22, %s1245_s22  ;;  %v922_v25 = vsel %vm55_vm0, %v1210_v23, %v1209_v20  ;;  %v1212_v26 = vld [vmem:[%s1981_s0 - $0x2e7] ss:$144 sm:%s929_s12]   ;;  %v1083_v27 = vld [vmem:[%s1981_s0 + $0x40] ss:$8 sm:$0xf0]  }
  0x50   :  { %v927_v28 = vsel %vm60_vm1, %v1211_v24, %v922_v25  ;;  %v1213_v29 = vld [vmem:[%s1981_s0 + $0x81] ss:$144 sm:%s945_s13]   ;;  %v1214_v30 = vld [vmem:[%s1981_s0 - $0x97] ss:$144 sm:%s948_s26]   ;;  %v14_v31 = vsel %vm4_vm3, %v1083_v27, %v1082_v21 }
  0x51   :  { %v932_v32 = vsel %vm65_vm2, %v1212_v26, %v927_v28  ;;  %v951_v33 = vsel %vm55_vm0, %v1214_v30, %v1213_v29  ;;  %17 = vst.msk [vmem:[#allocation0 + $0x40] ss:$8 sm:$0xf] %vm6_vm4, %v14_v31   ;;  %v1086_v34 = vld [vmem:[%s1981_s0 + $0xc0] ss:$8 sm:$0xf]  }
  0x52   :  { %v1087_v35 = vld [vmem:[%s1981_s0 + $0xc0] ss:$8 sm:$0xf0]   ;;  %19 = vst.msk [vmem:[#allocation0 + $0x40] ss:$8 sm:$0xf0] %vm6_vm4, %v14_v31   ;;  %933 = vrot.lane.b32.xlu1 %v932_v32, %s1245_s22 }
  0x53   :  { %v38_v36 = vsel %vm4_vm3, %v1087_v35, %v1086_v34  ;;  %v1088_v37 = vld [vmem:[%s1981_s0 + $0x100] ss:$8 sm:$0xf]   ;;  %952 = vrot.lane.b32.xlu0 %v951_v33, %s1245_s22 }
  0x54   :  { %41 = vst.msk [vmem:[#allocation0 + $0x31] ss:$8 sm:$0xf] %vm6_vm4, %v38_v36   ;;  %43 = vst.msk [vmem:[#allocation0 + $0x31] ss:$8 sm:$0xf0] %vm6_vm4, %v38_v36  }
  0x55   :  { %48 = vst.msk [vmem:[#allocation0 + $0x71] ss:$8 sm:$0xf] %vm6_vm4, %v1088_v37  }
  0x77   :  { %v68_v38 = vpop.permute.xlu0 %67  }
  0x78   :  { %70 = vst.msk [vmem:[#allocation0] sm:$0x3] %vm69_vm5, %v68_v38   ;;  %72 = vst.msk [vmem:[#allocation0 + $0x6] sm:$0xc] %vm69_vm5, %v68_v38  }
  0x79   :  { %74 = vst.msk [vmem:[#allocation0 + $0xc] sm:$0x30] %vm69_vm5, %v68_v38   ;;  %76 = vst.msk [vmem:[#allocation0 + $0x12] sm:$0xc0] %vm69_vm5, %v68_v38   ;;  %v125_v39 = vpop.permute.xlu1 %124  }
  0x7a   :  { %128 = vst.msk [vmem:[#allocation0 + $0x40] sm:$0x3] %vm69_vm5, %v125_v39   ;;  %130 = vst.msk [vmem:[#allocation0 + $0x46] sm:$0xc] %vm69_vm5, %v125_v39  }
  0x7b   :  { %132 = vst.msk [vmem:[#allocation0 + $0x4c] sm:$0x30] %vm69_vm5, %v125_v39   ;;  %134 = vst.msk [vmem:[#allocation0 + $0x52] sm:$0xc0] %vm69_vm5, %v125_v39  }
  0x7c   :  { %v96_v40 = vpop.permute.xlu0 %95  }
  0x7d   :  { %99 = vst.msk [vmem:[#allocation0 + $0x20] sm:$0x3] %vm69_vm5, %v96_v40   ;;  %101 = vst.msk [vmem:[#allocation0 + $0x26] sm:$0xc] %vm69_vm5, %v96_v40  }
  0x7e   :  { %103 = vst.msk [vmem:[#allocation0 + $0x2c] sm:$0x30] %vm69_vm5, %v96_v40   ;;  %105 = vst.msk [vmem:[#allocation0 + $0x32] sm:$0xc0] %vm69_vm5, %v96_v40   ;;  %v154_v41 = vpop.permute.xlu1 %153  }
  0x7f   :  { %157 = vst.msk [vmem:[#allocation0 + $0x60] sm:$0x3] %vm69_vm5, %v154_v41   ;;  %159 = vst.msk [vmem:[#allocation0 + $0x66] sm:$0xc] %vm69_vm5, %v154_v41  }
  0x80   :  { %161 = vst.msk [vmem:[#allocation0 + $0x6c] sm:$0x30] %vm69_vm5, %v154_v41   ;;  %163 = vst.msk [vmem:[#allocation0 + $0x72] sm:$0xc0] %vm69_vm5, %v154_v41   ;;  %v173_v42 = vpop.permute.xlu0 %172  }
  0x81   :  { %176 = vst.msk [vmem:[#allocation0 + $0x80] sm:$0x3] %vm69_vm5, %v173_v42   ;;  %178 = vst.msk [vmem:[#allocation0 + $0x86] sm:$0xc] %vm69_vm5, %v173_v42  }
  0x82   :  { %v198_v43 = vpop.permute.xlu1 %197  }
  0x83   :  { %200 = vst.msk [vmem:[#allocation0] sm:$0x3] %vm199_vm6, %v198_v43   ;;  %202 = vst.msk [vmem:[#allocation0 + $0x6] sm:$0xc] %vm199_vm6, %v198_v43  }
  0x84   :  { %204 = vst.msk [vmem:[#allocation0 + $0xc] sm:$0x30] %vm199_vm6, %v198_v43   ;;  %206 = vst.msk [vmem:[#allocation0 + $0x12] sm:$0xc0] %vm199_vm6, %v198_v43  }
  0x85   :  { %v226_v44 = vpop.permute.xlu0 %225  }
  0x86   :  { %229 = vst.msk [vmem:[#allocation0 + $0x20] sm:$0x3] %vm199_vm6, %v226_v44   ;;  %231 = vst.msk [vmem:[#allocation0 + $0x26] sm:$0xc] %vm199_vm6, %v226_v44  }
  0x87   :  { %233 = vst.msk [vmem:[#allocation0 + $0x2c] sm:$0x30] %vm199_vm6, %v226_v44   ;;  %235 = vst.msk [vmem:[#allocation0 + $0x32] sm:$0xc0] %vm199_vm6, %v226_v44   ;;  %v255_v45 = vpop.permute.xlu1 %254  }
  0x88   :  { %258 = vst.msk [vmem:[#allocation0 + $0x40] sm:$0x3] %vm199_vm6, %v255_v45   ;;  %260 = vst.msk [vmem:[#allocation0 + $0x46] sm:$0xc] %vm199_vm6, %v255_v45  }
  0x89   :  { %262 = vst.msk [vmem:[#allocation0 + $0x4c] sm:$0x30] %vm199_vm6, %v255_v45   ;;  %264 = vst.msk [vmem:[#allocation0 + $0x52] sm:$0xc0] %vm199_vm6, %v255_v45  }
  0x8a   :  { %v284_v46 = vpop.permute.xlu0 %283  }
  0x8b   :  { %287 = vst.msk [vmem:[#allocation0 + $0x60] sm:$0x3] %vm199_vm6, %v284_v46   ;;  %289 = vst.msk [vmem:[#allocation0 + $0x66] sm:$0xc] %vm199_vm6, %v284_v46   ;;  %v303_v47 = vpop.permute.xlu1 %302  }
  0x8c   :  { %291 = vst.msk [vmem:[#allocation0 + $0x6c] sm:$0x30] %vm199_vm6, %v284_v46   ;;  %293 = vst.msk [vmem:[#allocation0 + $0x72] sm:$0xc0] %vm199_vm6, %v284_v46  }
  0x8d   :  { %306 = vst.msk [vmem:[#allocation0 + $0x80] sm:$0x3] %vm199_vm6, %v303_v47   ;;  %308 = vst.msk [vmem:[#allocation0 + $0x86] sm:$0xc] %vm199_vm6, %v303_v47  }
  0x8e   :  { %v328_v48 = vpop.permute.xlu0 %327  }
  0x8f   :  { %330 = vst.msk [vmem:[#allocation0] sm:$0x3] %vm329_vm7, %v328_v48   ;;  %332 = vst.msk [vmem:[#allocation0 + $0x6] sm:$0xc] %vm329_vm7, %v328_v48  }
  0x90   :  { %334 = vst.msk [vmem:[#allocation0 + $0xc] sm:$0x30] %vm329_vm7, %v328_v48   ;;  %336 = vst.msk [vmem:[#allocation0 + $0x12] sm:$0xc0] %vm329_vm7, %v328_v48   ;;  %v356_v49 = vpop.permute.xlu1 %355  }
  0x91   :  { %359 = vst.msk [vmem:[#allocation0 + $0x20] sm:$0x3] %vm329_vm7, %v356_v49   ;;  %361 = vst.msk [vmem:[#allocation0 + $0x26] sm:$0xc] %vm329_vm7, %v356_v49  }
  0x92   :  { %363 = vst.msk [vmem:[#allocation0 + $0x2c] sm:$0x30] %vm329_vm7, %v356_v49   ;;  %365 = vst.msk [vmem:[#allocation0 + $0x32] sm:$0xc0] %vm329_vm7, %v356_v49  }
  0x93   :  { %v385_v50 = vpop.permute.xlu0 %384  }
  0x94   :  { %388 = vst.msk [vmem:[#allocation0 + $0x40] sm:$0x3] %vm329_vm7, %v385_v50   ;;  %390 = vst.msk [vmem:[#allocation0 + $0x46] sm:$0xc] %vm329_vm7, %v385_v50  }
  0x95   :  { %392 = vst.msk [vmem:[#allocation0 + $0x4c] sm:$0x30] %vm329_vm7, %v385_v50   ;;  %394 = vst.msk [vmem:[#allocation0 + $0x52] sm:$0xc0] %vm329_vm7, %v385_v50   ;;  %v414_v51 = vpop.permute.xlu1 %413  }
  0x96   :  { %417 = vst.msk [vmem:[#allocation0 + $0x60] sm:$0x3] %vm329_vm7, %v414_v51   ;;  %419 = vst.msk [vmem:[#allocation0 + $0x66] sm:$0xc] %vm329_vm7, %v414_v51  }
  0x97   :  { %421 = vst.msk [vmem:[#allocation0 + $0x6c] sm:$0x30] %vm329_vm7, %v414_v51   ;;  %423 = vst.msk [vmem:[#allocation0 + $0x72] sm:$0xc0] %vm329_vm7, %v414_v51   ;;  %v433_v52 = vpop.permute.xlu0 %432  }
  0x98   :  { %436 = vst.msk [vmem:[#allocation0 + $0x80] sm:$0x3] %vm329_vm7, %v433_v52   ;;  %438 = vst.msk [vmem:[#allocation0 + $0x86] sm:$0xc] %vm329_vm7, %v433_v52  }
  0x99   :  { %v458_v53 = vpop.permute.xlu1 %457  }
  0x9a   :  { %460 = vst.msk [vmem:[#allocation0] sm:$0x3] %vm459_vm8, %v458_v53   ;;  %462 = vst.msk [vmem:[#allocation0 + $0x6] sm:$0xc] %vm459_vm8, %v458_v53  }
  0x9b   :  { %464 = vst.msk [vmem:[#allocation0 + $0xc] sm:$0x30] %vm459_vm8, %v458_v53   ;;  %466 = vst.msk [vmem:[#allocation0 + $0x12] sm:$0xc0] %vm459_vm8, %v458_v53  }
  0x9c   :  { %v486_v54 = vpop.permute.xlu0 %485  }
  0x9d   :  { %489 = vst.msk [vmem:[#allocation0 + $0x20] sm:$0x3] %vm459_vm8, %v486_v54   ;;  %491 = vst.msk [vmem:[#allocation0 + $0x26] sm:$0xc] %vm459_vm8, %v486_v54  }
  0x9e   :  { %493 = vst.msk [vmem:[#allocation0 + $0x2c] sm:$0x30] %vm459_vm8, %v486_v54   ;;  %495 = vst.msk [vmem:[#allocation0 + $0x32] sm:$0xc0] %vm459_vm8, %v486_v54   ;;  %v515_v55 = vpop.permute.xlu1 %514  }
  0x9f   :  { %518 = vst.msk [vmem:[#allocation0 + $0x40] sm:$0x3] %vm459_vm8, %v515_v55   ;;  %520 = vst.msk [vmem:[#allocation0 + $0x46] sm:$0xc] %vm459_vm8, %v515_v55  }
  0xa0   :  { %522 = vst.msk [vmem:[#allocation0 + $0x4c] sm:$0x30] %vm459_vm8, %v515_v55   ;;  %524 = vst.msk [vmem:[#allocation0 + $0x52] sm:$0xc0] %vm459_vm8, %v515_v55  }
  0xa1   :  { %v544_v56 = vpop.permute.xlu0 %543  }
  0xa2   :  { %547 = vst.msk [vmem:[#allocation0 + $0x60] sm:$0x3] %vm459_vm8, %v544_v56   ;;  %549 = vst.msk [vmem:[#allocation0 + $0x66] sm:$0xc] %vm459_vm8, %v544_v56   ;;  %v563_v57 = vpop.permute.xlu1 %562  }
  0xa3   :  { %551 = vst.msk [vmem:[#allocation0 + $0x6c] sm:$0x30] %vm459_vm8, %v544_v56   ;;  %553 = vst.msk [vmem:[#allocation0 + $0x72] sm:$0xc0] %vm459_vm8, %v544_v56  }
  0xa4   :  { %566 = vst.msk [vmem:[#allocation0 + $0x80] sm:$0x3] %vm459_vm8, %v563_v57   ;;  %568 = vst.msk [vmem:[#allocation0 + $0x86] sm:$0xc] %vm459_vm8, %v563_v57  }
  0xa5   :  { %v588_v58 = vpop.permute.xlu0 %587  }
  0xa6   :  { %590 = vst.msk [vmem:[#allocation0] sm:$0x3] %vm589_vm9, %v588_v58   ;;  %592 = vst.msk [vmem:[#allocation0 + $0x6] sm:$0xc] %vm589_vm9, %v588_v58  }
  0xa7   :  { %594 = vst.msk [vmem:[#allocation0 + $0xc] sm:$0x30] %vm589_vm9, %v588_v58   ;;  %596 = vst.msk [vmem:[#allocation0 + $0x12] sm:$0xc0] %vm589_vm9, %v588_v58   ;;  %v616_v59 = vpop.permute.xlu1 %615  }
  0xa8   :  { %619 = vst.msk [vmem:[#allocation0 + $0x20] sm:$0x3] %vm589_vm9, %v616_v59   ;;  %621 = vst.msk [vmem:[#allocation0 + $0x26] sm:$0xc] %vm589_vm9, %v616_v59  }
  0xa9   :  { %623 = vst.msk [vmem:[#allocation0 + $0x2c] sm:$0x30] %vm589_vm9, %v616_v59   ;;  %625 = vst.msk [vmem:[#allocation0 + $0x32] sm:$0xc0] %vm589_vm9, %v616_v59  }
  0xaa   :  { %v645_v60 = vpop.permute.xlu0 %644  }
  0xab   :  { %648 = vst.msk [vmem:[#allocation0 + $0x40] sm:$0x3] %vm589_vm9, %v645_v60   ;;  %650 = vst.msk [vmem:[#allocation0 + $0x46] sm:$0xc] %vm589_vm9, %v645_v60  }
  0xac   :  { %652 = vst.msk [vmem:[#allocation0 + $0x4c] sm:$0x30] %vm589_vm9, %v645_v60   ;;  %654 = vst.msk [vmem:[#allocation0 + $0x52] sm:$0xc0] %vm589_vm9, %v645_v60   ;;  %v674_v61 = vpop.permute.xlu1 %673  }
  0xad   :  { %677 = vst.msk [vmem:[#allocation0 + $0x60] sm:$0x3] %vm589_vm9, %v674_v61   ;;  %679 = vst.msk [vmem:[#allocation0 + $0x66] sm:$0xc] %vm589_vm9, %v674_v61  }
  0xae   :  { %681 = vst.msk [vmem:[#allocation0 + $0x6c] sm:$0x30] %vm589_vm9, %v674_v61   ;;  %683 = vst.msk [vmem:[#allocation0 + $0x72] sm:$0xc0] %vm589_vm9, %v674_v61   ;;  %v693_v62 = vpop.permute.xlu0 %692  }
  0xaf   :  { %696 = vst.msk [vmem:[#allocation0 + $0x80] sm:$0x3] %vm589_vm9, %v693_v62   ;;  %698 = vst.msk [vmem:[#allocation0 + $0x86] sm:$0xc] %vm589_vm9, %v693_v62  }
  0xb0   :  { %v718_v63 = vpop.permute.xlu1 %717  }
  0xb1   :  { %720 = vst.msk [vmem:[#allocation0] sm:$0x3] %vm719_vm10, %v718_v63   ;;  %722 = vst.msk [vmem:[#allocation0 + $0x6] sm:$0xc] %vm719_vm10, %v718_v63  }
  0xb2   :  { %724 = vst.msk [vmem:[#allocation0 + $0xc] sm:$0x30] %vm719_vm10, %v718_v63   ;;  %726 = vst.msk [vmem:[#allocation0 + $0x12] sm:$0xc0] %vm719_vm10, %v718_v63  }
  0xb3   :  { %v746_v0 = vpop.permute.xlu0 %745  }
  0xb4   :  { %749 = vst.msk [vmem:[#allocation0 + $0x20] sm:$0x3] %vm719_vm10, %v746_v0   ;;  %751 = vst.msk [vmem:[#allocation0 + $0x26] sm:$0xc] %vm719_vm10, %v746_v0  }
  0xb5   :  { %753 = vst.msk [vmem:[#allocation0 + $0x2c] sm:$0x30] %vm719_vm10, %v746_v0   ;;  %755 = vst.msk [vmem:[#allocation0 + $0x32] sm:$0xc0] %vm719_vm10, %v746_v0   ;;  %v775_v1 = vpop.permute.xlu1 %774  }
  0xb6   :  { %778 = vst.msk [vmem:[#allocation0 + $0x40] sm:$0x3] %vm719_vm10, %v775_v1   ;;  %780 = vst.msk [vmem:[#allocation0 + $0x46] sm:$0xc] %vm719_vm10, %v775_v1  }
  0xb7   :  { %782 = vst.msk [vmem:[#allocation0 + $0x4c] sm:$0x30] %vm719_vm10, %v775_v1   ;;  %784 = vst.msk [vmem:[#allocation0 + $0x52] sm:$0xc0] %vm719_vm10, %v775_v1  }
  0xb8   :  { %v804_v2 = vpop.permute.xlu0 %803  }
  0xb9   :  { %807 = vst.msk [vmem:[#allocation0 + $0x60] sm:$0x3] %vm719_vm10, %v804_v2   ;;  %809 = vst.msk [vmem:[#allocation0 + $0x66] sm:$0xc] %vm719_vm10, %v804_v2   ;;  %v823_v3 = vpop.permute.xlu1 %822  }
  0xba   :  { %811 = vst.msk [vmem:[#allocation0 + $0x6c] sm:$0x30] %vm719_vm10, %v804_v2   ;;  %813 = vst.msk [vmem:[#allocation0 + $0x72] sm:$0xc0] %vm719_vm10, %v804_v2  }
  0xbb   :  { %826 = vst.msk [vmem:[#allocation0 + $0x80] sm:$0x3] %vm719_vm10, %v823_v3   ;;  %828 = vst.msk [vmem:[#allocation0 + $0x86] sm:$0xc] %vm719_vm10, %v823_v3  }
  0xbc   :  { %v848_v4 = vpop.permute.xlu0 %847  }
  0xbd   :  { %850 = vst.msk [vmem:[#allocation0] sm:$0x3] %vm849_vm11, %v848_v4   ;;  %852 = vst.msk [vmem:[#allocation0 + $0x6] sm:$0xc] %vm849_vm11, %v848_v4  }
  0xbe   :  { %854 = vst.msk [vmem:[#allocation0 + $0xc] sm:$0x30] %vm849_vm11, %v848_v4   ;;  %856 = vst.msk [vmem:[#allocation0 + $0x12] sm:$0xc0] %vm849_vm11, %v848_v4   ;;  %v876_v5 = vpop.permute.xlu1 %875  }
  0xbf   :  { %879 = vst.msk [vmem:[#allocation0 + $0x20] sm:$0x3] %vm849_vm11, %v876_v5   ;;  %881 = vst.msk [vmem:[#allocation0 + $0x26] sm:$0xc] %vm849_vm11, %v876_v5  }
  0xc0   :  { %883 = vst.msk [vmem:[#allocation0 + $0x2c] sm:$0x30] %vm849_vm11, %v876_v5   ;;  %885 = vst.msk [vmem:[#allocation0 + $0x32] sm:$0xc0] %vm849_vm11, %v876_v5  }
  0xc1   :  { %v905_v6 = vpop.permute.xlu0 %904  }
  0xc2   :  { %908 = vst.msk [vmem:[#allocation0 + $0x40] sm:$0x3] %vm849_vm11, %v905_v6   ;;  %910 = vst.msk [vmem:[#allocation0 + $0x46] sm:$0xc] %vm849_vm11, %v905_v6  }
  0xc3   :  { %912 = vst.msk [vmem:[#allocation0 + $0x4c] sm:$0x30] %vm849_vm11, %v905_v6   ;;  %914 = vst.msk [vmem:[#allocation0 + $0x52] sm:$0xc0] %vm849_vm11, %v905_v6  }
  0xc4   :  { %v962_v7 = vld [vmem:[#allocation0] sm:$0x3]  ;;  %v966_v8 = vld [vmem:[#allocation0 + $0x8] sm:$0x3]  ;;  %v934_v10 = vpop.permute.xlu1 %933  }
  0xc5   :  { %v971_v9 = vld [vmem:[#allocation0 + $0x10] sm:$0x3]  ;;  %964 = vst [vmem:[%s1982_s1] sm:$0x3] %v962_v7  ;;  %1215 = vst [vmem:[%s1982_s1 + $0x2] sm:$0x3] %v966_v8  ;;  %v953_v12 = vpop.permute.xlu0 %952  }
  0xc6   :  { %1216 = vst [vmem:[%s1982_s1 + $0x4] sm:$0x3] %v971_v9  ;;  %v977_v11 = vld [vmem:[#allocation0 + $0x18] sm:$0x3]  ;;  %937 = vst.msk [vmem:[#allocation0 + $0x60] sm:$0x3] %vm849_vm11, %v934_v10  }
  0xc7   :  { %939 = vst.msk [vmem:[#allocation0 + $0x66] sm:$0xc] %vm849_vm11, %v934_v10   ;;  %941 = vst.msk [vmem:[#allocation0 + $0x6c] sm:$0x30] %vm849_vm11, %v934_v10   ;;  %v983_v13 = vld [vmem:[#allocation0 + $0x20] sm:$0x3] }
  0xc8   :  { %943 = vst.msk [vmem:[#allocation0 + $0x72] sm:$0xc0] %vm849_vm11, %v934_v10   ;;  %1217 = vst [vmem:[%s1982_s1 + $0x6] sm:$0x3] %v977_v11  ;;  %v989_v14 = vld [vmem:[#allocation0 + $0x28] sm:$0x3] }
  0xc9   :  { %956 = vst.msk [vmem:[#allocation0 + $0x80] sm:$0x3] %vm849_vm11, %v953_v12   ;;  %958 = vst.msk [vmem:[#allocation0 + $0x86] sm:$0xc] %vm849_vm11, %v953_v12   ;;  %v995_v15 = vld [vmem:[#allocation0 + $0x30] sm:$0x3] }
  0xca   :  { %1218 = vst [vmem:[%s1982_s1 + $0x8] sm:$0x3] %v983_v13  ;;  %1219 = vst [vmem:[%s1982_s1 + $0xa] sm:$0x3] %v989_v14  ;;  %v1001_v16 = vld [vmem:[#allocation0 + $0x38] sm:$0x3] }
  0xcb   :  { %1220 = vst [vmem:[%s1982_s1 + $0xc] sm:$0x3] %v995_v15  ;;  %1221 = vst [vmem:[%s1982_s1 + $0xe] sm:$0x3] %v1001_v16  ;;  %v1007_v17 = vld [vmem:[#allocation0 + $0x40] sm:$0x3] }
  0xcc   :  { %v1013_v18 = vld [vmem:[#allocation0 + $0x48] sm:$0x3]  ;;  %v1019_v19 = vld [vmem:[#allocation0 + $0x50] sm:$0x3]  ;;  %1222 = vst [vmem:[%s1982_s1 + $0x10] sm:$0x3] %v1007_v17 }
  0xcd   :  { %1223 = vst [vmem:[%s1982_s1 + $0x12] sm:$0x3] %v1013_v18  ;;  %1224 = vst [vmem:[%s1982_s1 + $0x14] sm:$0x3] %v1019_v19  ;;  %v1025_v20 = vld [vmem:[#allocation0 + $0x58] sm:$0x3] }
  0xce   :  { %1225 = vst [vmem:[%s1982_s1 + $0x16] sm:$0x3] %v1025_v20  ;;  %v1031_v21 = vld [vmem:[#allocation0 + $0x60] sm:$0x3]  ;;  %v1037_v22 = vld [vmem:[#allocation0 + $0x68] sm:$0x3] }
  0xcf   :  { %v1043_v23 = vld [vmem:[#allocation0 + $0x70] sm:$0x3]  ;;  %1226 = vst [vmem:[%s1982_s1 + $0x18] sm:$0x3] %v1031_v21  ;;  %1227 = vst [vmem:[%s1982_s1 + $0x1a] sm:$0x3] %v1037_v22 }
  0xd0   :  { %1228 = vst [vmem:[%s1982_s1 + $0x1c] sm:$0x3] %v1043_v23  ;;  %v1049_v24 = vld [vmem:[#allocation0 + $0x78] sm:$0x3]  ;;  %v1055_v25 = vld [vmem:[#allocation0 + $0x80] sm:$0x3] }
  0xd1   :  { %v1061_v26 = vld [vmem:[#allocation0 + $0x88] sm:$0x3]  ;;  %1229 = vst [vmem:[%s1982_s1 + $0x1e] sm:$0x3] %v1049_v24  ;;  %1230 = vst [vmem:[%s1982_s1 + $0x20] sm:$0x3] %v1055_v25 }
  0xd2   :  { %1231 = vst [vmem:[%s1982_s1 + $0x22] sm:$0x3] %v1061_v26 }

// kernel: modulated_deform_conv.1
= control target key start
LH: loop header
LB: loop body
LE: loop exit
PB: predicated region body
PF: predicated region fallthrough
CT: control target
= control target key end

     0   :  { %s487_s12 = smov 0   ;;  %s489_s13 = smov 0   ;;  %s526_s0 = inlined_call_operand.vmem [shape: bf16[2,48,256], index: 0, kind: input, shape index: {}]   ;;  %s527_s1 = inlined_call_operand.vmem [shape: bf16[8,48], index: 1, kind: input, shape index: {}]   ;;  %s528_s2 = inlined_call_operand.vmem [shape: f32[8,1], index: 2, kind: input, shape index: {}]   ;;  %s529_s3 = inlined_call_operand.vmem [shape: f32[2,8,256], index: 3, kind: output, shape index: {}]  }
   0x1   :  { %s491_s14 = smov 0  }
   0x2 LB: > { %s25_s15 = sadd.s32 1, %s460_s13  ;;  %p392_p0 = scmp.ge.s32.totalorder %s464_s14, 1  ;;  %s464_s14 = sphi %s491_s14, %s13_s14   ;;  %s460_s13 = sphi %s489_s13, %s531_s13   ;;  %s456_s12 = sphi %s487_s12, %s530_s12  }
   0x3   : > { %p27_p1 = scmp.ge.s32.totalorder %s25_s15, 2  ;;  %p158_p2 = scmp.lt.s32.totalorder %s464_s14, 3 }
   0x5   : > { %s533_s15 = smov (%p27_p1, %s25_s15), 0  ;;  %p159_p3 = pnand %p392_p0, %p158_p2 }
   0x6   : > { %p191_p4 = scmp.lt.s32.totalorder (!%p159_p3), %s456_s12, 1  ;;  %v218_v0 = vld [vmem:[%s528_s2] sm:$0xff] (!%p159_p3)  ;;  %v466_v1 = vmov (!%p159_p3), 0   ;;  %vm254_vm0 = vcmask (!%p159_p3), 392192  }
   0x7   : > { %162 = sbr.rel (%p159_p3) target bundleno = 247 (0xf7), region = 32  ;;  %290 = vmatprep.mubr.bf16.mxu0 (!%p159_p3), %v466_v1  ;;  %432 = vset.pattern.permute.xlu0 (!%p159_p3), %v466_v1  ;;  %v211_v8 = vld [vmem:[%s527_s1] sm:$0xf] (!%p159_p3) }
   0x8   : > { %221 = vperm.xlu0 (!%p159_p3), %432, %v218_v0  }
   0xe   : > { %s535_s12 = smov (!%p191_p4, %s456_s12), 1 }
   0xf   : > { %s406_s18 = smul.u32 48, %s535_s12  ;;  %s405_s24 = sshll.u32 %s535_s12, 4 }
  0x10   : > { %s208_s27 = scalar_lea.vmem %s529_s3, %s405_s24 }
  0x11   : > { %s198_s21 = scalar_lea.vmem %s526_s0, %s406_s18 }
  0x12   : > { %v433_v2 = vld [vmem:[%s198_s21 + $0x4] ss:$8 sps:$4 sm:$0xff]   ;;  %v435_v3 = vld [vmem:[%s198_s21] ss:$8 sps:$4 sm:$0xff]   ;;  %v436_v4 = vld [vmem:[%s198_s21 + $0x14] ss:$8 sps:$4 sm:$0xff]  }
  0x13   : > { %258 = vmatprep.subr.bf16.mxu0 %v433_v2  ;;  %v438_v5 = vld [vmem:[%s198_s21 + $0x10] ss:$8 sps:$4 sm:$0xff]   ;;  %v439_v6 = vld [vmem:[%s198_s21 + $0x24] ss:$8 sps:$4 sm:$0xff]   ;;  %v441_v7 = vld [vmem:[%s198_s21 + $0x20] ss:$8 sps:$4 sm:$0xff]  }
  0x14   : > { %259 = vmatpush1.bf16.msra.mxu0 %v435_v3 }
  0x15   : > { %260 = vmatprep.subr.bf16.mxu0 %v436_v4 }
  0x18   : > { %261 = vmatpush1.bf16.msra.mxu0 %v438_v5 }
  0x19   : > { %262 = vmatprep.subr.bf16.mxu0 %v439_v6 }
  0x1c   : > { %263 = vmatpush1.bf16.msra.mxu0 %v441_v7 }
  0x1f   : > { %402 = vmatmul.mubr.msk.bf16.vlgmr.msra.gmra.mrb[0].mxu0 %vm254_vm0, %v211_v8 }
  0x87   : > { %v222_v9 = vpop.permute.xlu0 %221 }
  0xf2   : > { %v292_v10 = vpop.f32.mrb[0].mxu0 }
  0xf3   : > { %v293_v11 = vadd.f32 %v292_v10, %v222_v9  ;;  %v294_v12 = vpop.f32.mrb[1].mxu0 }
  0xf4   : > { %v295_v13 = vadd.f32 %v294_v12, %v222_v9  ;;  %v296_v14 = vpop.f32.mrb[2].mxu0 }
  0xf5   : > { %299 = vst [vmem:[%s208_s27] sm:$0xff] %v293_v11  ;;  %v297_v15 = vpop.f32.mrb[3].mxu0 }
  0xf6   : > { %300 = vst [vmem:[%s208_s27 + $0x8] sm:$0xff] %v295_v13 }
  0xf7 PF: > { %s13_s14 = sadd.s32 1, %s464_s14   ;;  %s530_s12 = smov %s460_s13 }
  0xf8   : > { %p10_p5 = scmp.ge.s32.totalorder %s13_s14, 4   ;;  %s531_s13 = smov %s533_s15 }
  0xfa   :  { %12 = sbr.rel (!%p10_p5) target bundleno = 2 (0x2), region = 62 }

</bundles_post_ra>
